<compile_context>
chip_gen: v6e
topology: v6e:2x2x1
jax: 0.10.0
libtpu: 0.0.40
codegen_flags: <defaults>
</compile_context>

<pallas_src>
import functools

import jax
import jax.numpy as jnp
import numpy as np
from jax.experimental import pallas as pl
from jax.experimental.pallas import tpu as pltpu

NEG_SLOPE = 0.01   # torch.nn.LeakyReLU default negative_slope
BN_EPS = 1e-5


# --------------------------------------------------------------------------
# Kernel
# --------------------------------------------------------------------------
def relation_meta_kernel(x_ref, w1_ref, s1_ref, o1_ref, w2_ref, s2_ref, o2_ref,
                         wr_ref, w3_ref, o3_ref, out_ref, *, few, apply_scales):
    """One grid step: a (block_b*few, feat) slab of support-pair rows."""
    rows, _ = x_ref.shape
    bb = rows // few
    h1 = w1_ref.shape[1]
    h2 = w2_ref.shape[1]
    ew = o1_ref.dtype                      # elementwise dtype (f32 or bf16)

    # rel_fc1: Linear (bias folded into BN offset) + BN1 (eval) + LeakyReLU
    z1 = jnp.dot(x_ref[...], w1_ref[...], preferred_element_type=jnp.float32)
    h = z1.reshape(bb, few, h1).astype(ew)
    if apply_scales:                       # static flag (scales not foldable)
        h = h * s1_ref[...]
    h = h + o1_ref[...]                    # (few, H1) broadcast over batch
    h = jnp.maximum(h, NEG_SLOPE * h)      # LeakyReLU, max form

    # rel_fc2: Linear + BN2 (eval) + LeakyReLU
    z2 = jnp.dot(h.reshape(rows, h1).astype(w2_ref.dtype), w2_ref[...],
                 preferred_element_type=jnp.float32)
    h = z2.reshape(bb, few, h2).astype(ew)
    if apply_scales:
        h = h * s2_ref[...]
    h = h + o2_ref[...]
    h = jnp.maximum(h, NEG_SLOPE * h)

    # rel_fc3 + BN3 + mean(few): all linear -> commute the `few` reduction
    # BEFORE fc3 (few-x fewer fc3 FLOPs / output bytes).  wr already folds
    # s3/few (and s1*s2 when the scales were folded through the activations).
    u = jnp.sum(h.astype(jnp.float32) * wr_ref[...], axis=1)        # (bb, H2)
    out = jnp.dot(u.astype(w3_ref.dtype), w3_ref[...],
                  preferred_element_type=jnp.float32) + o3_ref[...]
    out_ref[...] = out.astype(out_ref.dtype)


# --------------------------------------------------------------------------
# Parameter folding
# --------------------------------------------------------------------------
def _host_all_positive(a):
    """Host-side strict-positivity check; conservative (False) under tracing."""
    try:
        return bool(np.all(np.asarray(a) > 0))
    except Exception:                                  # traced / abstract value
        return False


def fold_params(params, *, compute_dtype, elementwise_dtype, out_pad):
    """Fold linear biases + eval-mode BN into per-layer offsets; fold the BN
    scales through the LeakyReLUs (positive homogeneity) when possible."""
    (w1, b1, s1, t1, w2, b2, s2, t2, w3, b3, s3, t3) = params
    few = s1.shape[0]
    out_size = w3.shape[1]

    off1 = b1 * s1 + t1                                # (few, H1)
    off2 = b2 * s2 + t2                                # (few, H2)
    off3 = jnp.mean(b3 * s3 + t3, axis=0, keepdims=True)   # (1, OUT)

    fold = _host_all_positive(s1) and _host_all_positive(s2)
    if fold:
        # LeakyReLU(s*z) == s*LeakyReLU(z) for s > 0 -> remove the per-element
        # scale multiplies from the kernel.
        o1 = off1 / s1
        o2 = off2 / (s1 * s2)
        wr = (s3 / few) * (s1 * s2)
        s1k = jnp.ones_like(s1)
        s2k = jnp.ones_like(s2)
    else:
        o1, o2 = off1, off2
        wr = s3 / few
        s1k, s2k = s1, s2

    # Lane-dense output: pad OUT up to a multiple of 128 (sliced in wrapper).
    pad = out_pad - out_size
    w3p = jnp.pad(w3, ((0, 0), (0, pad)))
    o3p = jnp.pad(off3, ((0, 0), (0, pad)))

    return (fold,
            w1.astype(compute_dtype),
            s1k.astype(elementwise_dtype), o1.astype(elementwise_dtype),
            w2.astype(compute_dtype),
            s2k.astype(elementwise_dtype), o2.astype(elementwise_dtype),
            wr.astype(jnp.float32),
            w3p.astype(compute_dtype), o3p.astype(jnp.float32))


# --------------------------------------------------------------------------
# Wrapper
# --------------------------------------------------------------------------
def _choose_block_b(B, few, feat, h1, h2, x_bytes, ew_bytes):
    """Batch-tile size: ~2 MiB of x per grid step (amortizes the ~0.35 us/step
    pipeline overhead, >=512 matmul rows), capped so the f32/elementwise h
    temporaries stay ~<=12 MiB -> the per-step working set fits comfortably in
    the explicit 40 MiB VMEM limit on every TPU generation."""
    rows = max(512, (2 << 20) // max(1, feat * x_bytes))
    rows = min(rows, max(512, (12 << 20) // max(1, (h1 + h2) * (4 + ew_bytes))))
    bb = max(8, rows // few)
    if B >= 32:
        bb = min(bb, -(-B // 2))    # keep >=2 grid steps: v7x has 2 TensorCores
    return bb


def relation_meta_learner(x, params, *, block_b=None,
                          compute_dtype=jnp.bfloat16,
                          elementwise_dtype=None):
    """x: (B, few, 2, E) float32. Returns (B, 1, 1, out_size) float32.

    compute_dtype: matmul-operand dtype (bf16 default; pass float32 for a
    tight-accuracy path).  elementwise_dtype: dtype of the BN-offset /
    activation math (defaults to compute_dtype; pass float32 on v5e, whose
    VPU has no bf16 ALU)."""
    B, few, two, E = x.shape
    feat = two * E
    if elementwise_dtype is None:
        elementwise_dtype = compute_dtype

    w1_p, w2_p, w3_p = params[0], params[4], params[8]
    h1, h2, out_size = w1_p.shape[1], w2_p.shape[1], w3_p.shape[1]
    out_pad = -(-out_size // 128) * 128

    (fold, w1, s1, o1, w2, s2, o2, wr, w3, o3) = fold_params(
        params, compute_dtype=compute_dtype,
        elementwise_dtype=elementwise_dtype, out_pad=out_pad)

    x_bytes = np.dtype(compute_dtype).itemsize
    ew_bytes = np.dtype(elementwise_dtype).itemsize
    if block_b is None:
        block_b = _choose_block_b(B, few, feat, h1, h2, x_bytes, ew_bytes)
    block_b = max(8, min(int(block_b), B))
    block_b = -(-block_b // 8) * 8
    padded_B = -(-B // block_b) * block_b

    # (B, few, 2, E) -> (B*few, 2E): contiguous reshapes, free in XLA.
    xf = x.reshape(B, few, feat).astype(compute_dtype)
    if padded_B != B:
        xf = jnp.pad(xf, ((0, padded_B - B), (0, 0), (0, 0)))
    x2d = xf.reshape(padded_B * few, feat)

    rows_per_step = block_b * few
    full = lambda a: pl.BlockSpec(a.shape, lambda b, _nd=a.ndim: (0,) * _nd)
    kernel = functools.partial(relation_meta_kernel, few=few,
                               apply_scales=not fold)

    out = pl.pallas_call(
        kernel,
        out_shape=jax.ShapeDtypeStruct((padded_B, out_pad), jnp.float32),
        grid_spec=pltpu.PrefetchScalarGridSpec(
            num_scalar_prefetch=0,
            grid=(padded_B // block_b,),
            in_specs=[
                pl.BlockSpec((rows_per_step, feat), lambda b: (b, 0)),
                full(w1), full(s1), full(o1),
                full(w2), full(s2), full(o2),
                full(wr), full(w3), full(o3),
            ],
            out_specs=pl.BlockSpec((block_b, out_pad), lambda b: (b, 0)),
        ),
        compiler_params=pltpu.CompilerParams(
            dimension_semantics=("parallel",),
            vmem_limit_bytes=40 * 1024 * 1024),
    )(x2d, w1, s1, o1, w2, s2, o2, wr, w3, o3)

    return out[:B, :out_size].reshape(B, 1, 1, out_size)


# --------------------------------------------------------------------------
# Parameters + plain-JAX reference (eval-mode PyTorch forward)
# --------------------------------------------------------------------------
def make_params(key, few, embed_size, num_hidden1, num_hidden2, out_size):
    """Deterministic parameter init mirroring the PyTorch module __init__."""
    k1, k2, k3, kb1, kb2, kb3 = jax.random.split(key, 6)

    def xavier_normal(k, fan_in, fan_out):
        std = (2.0 / (fan_in + fan_out)) ** 0.5
        # stored as (in, out) so the kernel does x @ W (== x @ W_torch.T)
        return std * jax.random.normal(k, (fan_in, fan_out), jnp.float32)

    def linear_bias(k, fan_in, fan_out):
        bound = 1.0 / (fan_in ** 0.5)
        return jax.random.uniform(k, (1, fan_out), jnp.float32, -bound, bound)

    def bn_eval_affine(few):
        # gamma=1, beta=0, running_mean=0, running_var=1 -> x / sqrt(1+eps)
        scale = jnp.full((few, 1), 1.0 / (1.0 + BN_EPS) ** 0.5, jnp.float32)
        shift = jnp.zeros((few, 1), jnp.float32)
        return scale, shift

    w1 = xavier_normal(k1, 2 * embed_size, num_hidden1)
    b1 = linear_bias(kb1, 2 * embed_size, num_hidden1)
    s1, t1 = bn_eval_affine(few)
    w2 = xavier_normal(k2, num_hidden1, num_hidden2)
    b2 = linear_bias(kb2, num_hidden1, num_hidden2)
    s2, t2 = bn_eval_affine(few)
    w3 = xavier_normal(k3, num_hidden2, out_size)
    b3 = linear_bias(kb3, num_hidden2, out_size)
    s3, t3 = bn_eval_affine(few)
    return (w1, b1, s1, t1, w2, b2, s2, t2, w3, b3, s3, t3)


def reference_forward(x, params):
    """Plain-JAX f32 reference of the (eval-mode) PyTorch forward."""
    (w1, b1, s1, t1, w2, b2, s2, t2, w3, b3, s3, t3) = params
    B, few, two, E = x.shape

    def leaky(v):
        return jnp.where(v >= 0, v, NEG_SLOPE * v)

    h = x.reshape(B, few, two * E)
    h = leaky((h @ w1 + b1) * s1 + t1)
    h = leaky((h @ w2 + b2) * s2 + t2)
    h = (h @ w3 + b3) * s3 + t3
    h = jnp.mean(h, axis=1)
    return h.reshape(B, 1, 1, -1)


if __name__ == "__main__":
    # small, forward-consistent shapes
    B, FEW, EMBED = 4, 8, 32
    H1, H2, OUT = 64, 64, 32

    key = jax.random.PRNGKey(0)
    kx, kp = jax.random.split(key)
    x = jax.random.normal(kx, (B, FEW, 2, EMBED), jnp.float32)
    params = make_params(kp, FEW, EMBED, H1, H2, OUT)
    ref = reference_forward(x, params)

    # 1) f32 compute/elementwise path (scale folding active) — tight check.
    out_f32 = jax.block_until_ready(
        relation_meta_learner(x, params, compute_dtype=jnp.float32))
    assert out_f32.shape == (B, 1, 1, OUT), out_f32.shape
    np.testing.assert_allclose(np.asarray(out_f32), np.asarray(ref),
                               atol=2e-3, rtol=2e-3)

    # 2) bf16 matmul + bf16 elementwise path with a multi-step grid and batch
    #    padding (B=36 -> 2 grid steps) — loose check.
    B2 = 36
    kx2, _ = jax.random.split(kx)
    x2 = jax.random.normal(kx2, (B2, FEW, 2, EMBED), jnp.float32)
    ref2 = reference_forward(x2, params)
    out_bf16 = jax.block_until_ready(
        relation_meta_learner(x2, params, compute_dtype=jnp.bfloat16))
    assert out_bf16.shape == (B2, 1, 1, OUT), out_bf16.shape
    np.testing.assert_allclose(np.asarray(out_bf16), np.asarray(ref2),
                               atol=1e-1, rtol=1e-1)

    # 3) Negative BN gamma on layer 2 -> scale folding disabled, general
    #    (apply_scales) kernel path — tight f32 check.
    params_neg = list(params)
    params_neg[6] = -params[6]          # s2 <- -s2
    params_neg = tuple(params_neg)
    ref3 = reference_forward(x, params_neg)
    out_neg = jax.block_until_ready(
        relation_meta_learner(x, params_neg, compute_dtype=jnp.float32))
    np.testing.assert_allclose(np.asarray(out_neg), np.asarray(ref3),
                               atol=2e-3, rtol=2e-3)

    print("KERNEL_OK")
</pallas_src>

<mosaic_0001>
module attributes {stable_mosaic.version = 11 : i64} {
  func.func @relation_meta_kernel(%arg0: i32, %arg1: memref<64x64xf32, #tpu.memory_space<vmem>>, %arg2: memref<64x64xf32, #tpu.memory_space<vmem>>, %arg3: memref<8x1xf32, #tpu.memory_space<vmem>>, %arg4: memref<8x64xf32, #tpu.memory_space<vmem>>, %arg5: memref<64x64xf32, #tpu.memory_space<vmem>>, %arg6: memref<8x1xf32, #tpu.memory_space<vmem>>, %arg7: memref<8x64xf32, #tpu.memory_space<vmem>>, %arg8: memref<8x1xf32, #tpu.memory_space<vmem>>, %arg9: memref<64x128xf32, #tpu.memory_space<vmem>>, %arg10: memref<1x128xf32, #tpu.memory_space<vmem>>, %arg11: memref<8x128xf32, #tpu.memory_space<vmem>>) attributes {dimension_semantics = [#tpu.dimension_semantics<parallel>], iteration_bounds = array<i64: 1>, scalar_prefetch = 0 : i64, scratch_operands = 0 : i64, tpu.core_type = #tpu.core_type<tc>, window_params = [{transform_indices = @transform_0, window_bounds = array<i64: 64, 64>}, {pipeline_mode = #tpu.pipeline_mode<synchronous>, transform_indices = @transform_1, window_bounds = array<i64: 64, 64>}, {pipeline_mode = #tpu.pipeline_mode<synchronous>, transform_indices = @transform_2, window_bounds = array<i64: 8, 1>}, {pipeline_mode = #tpu.pipeline_mode<synchronous>, transform_indices = @transform_3, window_bounds = array<i64: 8, 64>}, {pipeline_mode = #tpu.pipeline_mode<synchronous>, transform_indices = @transform_4, window_bounds = array<i64: 64, 64>}, {pipeline_mode = #tpu.pipeline_mode<synchronous>, transform_indices = @transform_5, window_bounds = array<i64: 8, 1>}, {pipeline_mode = #tpu.pipeline_mode<synchronous>, transform_indices = @transform_6, window_bounds = array<i64: 8, 64>}, {pipeline_mode = #tpu.pipeline_mode<synchronous>, transform_indices = @transform_7, window_bounds = array<i64: 8, 1>}, {pipeline_mode = #tpu.pipeline_mode<synchronous>, transform_indices = @transform_8, window_bounds = array<i64: 64, 128>}, {pipeline_mode = #tpu.pipeline_mode<synchronous>, transform_indices = @transform_9, window_bounds = array<i64: 1, 128>}, {transform_indices = @transform_10, window_bounds = array<i64: 8, 128>}]} {
    %c0 = arith.constant 0 : index
    %c0_0 = arith.constant 0 : index
    %0 = vector.load %arg1[%c0, %c0_0] : memref<64x64xf32, #tpu.memory_space<vmem>>, vector<64x64xf32>
    %c0_1 = arith.constant 0 : index
    %c0_2 = arith.constant 0 : index
    %1 = vector.load %arg2[%c0_1, %c0_2] : memref<64x64xf32, #tpu.memory_space<vmem>>, vector<64x64xf32>
    %cst = arith.constant dense<0.000000e+00> : vector<64x64xf32>
    %2 = tpu.matmul %0, %1, %cst {dimension_numbers = #tpu.dot_dimension_numbers<[1], [0], [0], [1], [0, 0, 1, 1], [], []>} : vector<64x64xf32>, vector<64x64xf32>, vector<64x64xf32> -> vector<64x64xf32>
    %3 = vector.shape_cast %2 : vector<64x64xf32> to vector<8x8x64xf32>
    %c0_3 = arith.constant 0 : index
    %c0_4 = arith.constant 0 : index
    %4 = vector.load %arg4[%c0_3, %c0_4] : memref<8x64xf32, #tpu.memory_space<vmem>>, vector<8x64xf32>
    %5 = vector.shape_cast %4 : vector<8x64xf32> to vector<1x8x64xf32>
    %6 = vector.broadcast %5 : vector<1x8x64xf32> to vector<8x8x64xf32>
    %7 = arith.addf %3, %6 : vector<8x8x64xf32>
    %cst_5 = arith.constant 0.00999999977 : f32
    %8 = vector.broadcast %cst_5 : f32 to vector<8x8x64xf32>
    %9 = arith.mulf %8, %7 : vector<8x8x64xf32>
    %10 = arith.maximumf %7, %9 : vector<8x8x64xf32>
    %11 = vector.shape_cast %10 : vector<8x8x64xf32> to vector<64x64xf32>
    %c0_6 = arith.constant 0 : index
    %c0_7 = arith.constant 0 : index
    %12 = vector.load %arg5[%c0_6, %c0_7] : memref<64x64xf32, #tpu.memory_space<vmem>>, vector<64x64xf32>
    %cst_8 = arith.constant dense<0.000000e+00> : vector<64x64xf32>
    %13 = tpu.matmul %11, %12, %cst_8 {dimension_numbers = #tpu.dot_dimension_numbers<[1], [0], [0], [1], [0, 0, 1, 1], [], []>} : vector<64x64xf32>, vector<64x64xf32>, vector<64x64xf32> -> vector<64x64xf32>
    %14 = vector.shape_cast %13 : vector<64x64xf32> to vector<8x8x64xf32>
    %c0_9 = arith.constant 0 : index
    %c0_10 = arith.constant 0 : index
    %15 = vector.load %arg7[%c0_9, %c0_10] : memref<8x64xf32, #tpu.memory_space<vmem>>, vector<8x64xf32>
    %16 = vector.shape_cast %15 : vector<8x64xf32> to vector<1x8x64xf32>
    %17 = vector.broadcast %16 : vector<1x8x64xf32> to vector<8x8x64xf32>
    %18 = arith.addf %14, %17 : vector<8x8x64xf32>
    %cst_11 = arith.constant 0.00999999977 : f32
    %19 = vector.broadcast %cst_11 : f32 to vector<8x8x64xf32>
    %20 = arith.mulf %19, %18 : vector<8x8x64xf32>
    %21 = arith.maximumf %18, %20 : vector<8x8x64xf32>
    %c0_12 = arith.constant 0 : index
    %c0_13 = arith.constant 0 : index
    %22 = vector.load %arg8[%c0_12, %c0_13] : memref<8x1xf32, #tpu.memory_space<vmem>>, vector<8x1xf32>
    %23 = vector.shape_cast %22 : vector<8x1xf32> to vector<1x8x1xf32>
    %24 = vector.broadcast %23 : vector<1x8x1xf32> to vector<8x8x64xf32>
    %25 = arith.mulf %21, %24 : vector<8x8x64xf32>
    %cst_14 = arith.constant dense<0.000000e+00> : vector<8x64xf32>
    %26 = vector.multi_reduction <add>, %25, %cst_14 [1] : vector<8x8x64xf32> to vector<8x64xf32>
    %c0_15 = arith.constant 0 : index
    %c0_16 = arith.constant 0 : index
    %27 = vector.load %arg9[%c0_15, %c0_16] : memref<64x128xf32, #tpu.memory_space<vmem>>, vector<64x128xf32>
    %cst_17 = arith.constant dense<0.000000e+00> : vector<8x128xf32>
    %28 = tpu.matmul %26, %27, %cst_17 {dimension_numbers = #tpu.dot_dimension_numbers<[1], [0], [0], [1], [0, 0, 1, 1], [], []>} : vector<8x64xf32>, vector<64x128xf32>, vector<8x128xf32> -> vector<8x128xf32>
    %c0_18 = arith.constant 0 : index
    %c0_19 = arith.constant 0 : index
    %29 = vector.load %arg10[%c0_18, %c0_19] : memref<1x128xf32, #tpu.memory_space<vmem>>, vector<1x128xf32>
    %30 = vector.broadcast %29 : vector<1x128xf32> to vector<8x128xf32>
    %31 = arith.addf %28, %30 : vector<8x128xf32>
    %c0_20 = arith.constant 0 : index
    %c0_21 = arith.constant 0 : index
    %32 = vector.load %arg11[%c0_20, %c0_21] : memref<8x128xf32, #tpu.memory_space<vmem>>, vector<8x128xf32>
    tpu.vector_store %arg11[%c0_20, %c0_21], %31 {strides = array<i32>} : memref<8x128xf32, #tpu.memory_space<vmem>>, vector<8x128xf32>,
    return
  }
  func.func @transform_0(%arg0: i32) -> (i32, i32) {
    %c0_i32 = arith.constant 0 : i32
    %c0_i32_0 = arith.constant 0 : i32
    return %arg0, %c0_i32 : i32, i32
  }
  func.func @transform_1(%arg0: i32) -> (i32, i32) {
    %c0_i32 = arith.constant 0 : i32
    %c0_i32_0 = arith.constant 0 : i32
    %c0_i32_1 = arith.constant 0 : i32
    return %c0_i32, %c0_i32_0 : i32, i32
  }
  func.func @transform_2(%arg0: i32) -> (i32, i32) {
    %c0_i32 = arith.constant 0 : i32
    %c0_i32_0 = arith.constant 0 : i32
    %c0_i32_1 = arith.constant 0 : i32
    return %c0_i32, %c0_i32_0 : i32, i32
  }
  func.func @transform_3(%arg0: i32) -> (i32, i32) {
    %c0_i32 = arith.constant 0 : i32
    %c0_i32_0 = arith.constant 0 : i32
    %c0_i32_1 = arith.constant 0 : i32
    return %c0_i32, %c0_i32_0 : i32, i32
  }
  func.func @transform_4(%arg0: i32) -> (i32, i32) {
    %c0_i32 = arith.constant 0 : i32
    %c0_i32_0 = arith.constant 0 : i32
    %c0_i32_1 = arith.constant 0 : i32
    return %c0_i32, %c0_i32_0 : i32, i32
  }
  func.func @transform_5(%arg0: i32) -> (i32, i32) {
    %c0_i32 = arith.constant 0 : i32
    %c0_i32_0 = arith.constant 0 : i32
    %c0_i32_1 = arith.constant 0 : i32
    return %c0_i32, %c0_i32_0 : i32, i32
  }
  func.func @transform_6(%arg0: i32) -> (i32, i32) {
    %c0_i32 = arith.constant 0 : i32
    %c0_i32_0 = arith.constant 0 : i32
    %c0_i32_1 = arith.constant 0 : i32
    return %c0_i32, %c0_i32_0 : i32, i32
  }
  func.func @transform_7(%arg0: i32) -> (i32, i32) {
    %c0_i32 = arith.constant 0 : i32
    %c0_i32_0 = arith.constant 0 : i32
    %c0_i32_1 = arith.constant 0 : i32
    return %c0_i32, %c0_i32_0 : i32, i32
  }
  func.func @transform_8(%arg0: i32) -> (i32, i32) {
    %c0_i32 = arith.constant 0 : i32
    %c0_i32_0 = arith.constant 0 : i32
    %c0_i32_1 = arith.constant 0 : i32
    return %c0_i32, %c0_i32_0 : i32, i32
  }
  func.func @transform_9(%arg0: i32) -> (i32, i32) {
    %c0_i32 = arith.constant 0 : i32
    %c0_i32_0 = arith.constant 0 : i32
    %c0_i32_1 = arith.constant 0 : i32
    return %c0_i32, %c0_i32_0 : i32, i32
  }
  func.func @transform_10(%arg0: i32) -> (i32, i32) {
    %c0_i32 = arith.constant 0 : i32
    %c0_i32_0 = arith.constant 0 : i32
    return %arg0, %c0_i32 : i32, i32
  }
}

</mosaic_0001>

<bundles_post_ra>
// kernel: tpu_custom_call.1
= control target key start
LH: loop header
LB: loop body
LE: loop exit
PB: predicated region body
PF: predicated region fallthrough
CT: control target
= control target key end

     0   :  { %15 = vsyncpa [#allocation3], 0  ;;  %s1004_s0 = inlined_call_operand.hbm [shape: f32[64,64], index: 0, kind: input, shape index: {}]   ;;  %s1005_s1 = inlined_call_operand.hbm [shape: f32[64,64], index: 1, kind: input, shape index: {}]   ;;  %s1006_s2 = inlined_call_operand.vmem [shape: f32[8,1], index: 2, kind: input, shape index: {}]   ;;  %s1007_s3 = inlined_call_operand.vmem [shape: f32[8,64], index: 3, kind: input, shape index: {}]   ;;  %s1008_s4 = inlined_call_operand.hbm [shape: f32[64,64], index: 4, kind: input, shape index: {}]   ;;  %s1009_s5 = inlined_call_operand.vmem [shape: f32[8,1], index: 5, kind: input, shape index: {}]   ;;  %s1010_s6 = inlined_call_operand.vmem [shape: f32[8,64], index: 6, kind: input, shape index: {}]   ;;  %s1011_s7 = inlined_call_operand.vmem [shape: f32[8,1], index: 7, kind: input, shape index: {}]   ;;  %s1012_s8 = inlined_call_operand.hbm [shape: f32[64,128], index: 8, kind: input, shape index: {}]   ;;  %s1013_s9 = inlined_call_operand.vmem [shape: f32[1,128], index: 9, kind: input, shape index: {}]   ;;  %s1014_s10 = inlined_call_operand.hbm [shape: f32[8,128], index: 10, kind: output, shape index: {}]  }
   0x1   :  { %16 = vsyncpa [#allocation6], 0 }
   0x2   :  { %17 = vsyncpa [#allocation9], 0 }
   0x3   :  { %18 = vsyncpa [#allocation4], 0  ;;  %s874_s5 = smov [#allocation5]   ;;  %s875_s13 = smov [#allocation2]  }
   0x4   :  { %s36_s12 = sshll.u32 %s874_s5, 4  ;;  %s24_s14 = sshll.u32 %s875_s13, 4  ;;  %s37_s12 = int_to_ptr.vmem [resolvable:$true] %s36_s12  ;;  %s25_s14 = int_to_ptr.vmem [resolvable:$true] %s24_s14 }
   0x5   :  { %s774_s15 = scalar_lea.vmem %s37_s12, 1024  ;;  %p779_p1 = scmp.lt.s32.totalorder %s37_s12, %s37_s12 }
   0x6   :  { %p775_p0 = scmp.ne.s32.totalorder %s37_s12, %s774_s15  ;;  %p780_p2 = scmp.lt.s32.totalorder %s774_s15, %s774_s15 }
   0x8   :  { %p781_p3 = por %p780_p2, %p779_p1 }
   0xa   :  { %p782_p4 = pnand %p781_p3, %p775_p0 }
   0xc   :  { %785 = shalt.err (!%p782_p4)
}
   0xd   :  { %s876_s16 = smov 128   ;;  %s877_s17 = smov 8  }
   0xe   :  { %42 = dma.hbm_to_vmem [thread:$0]  %s1005_s1, 1024, %s37_s12, [#allocation6], %s876_s16, %s876_s16, %s877_s17  }
   0xf   :  { %s794_s20 = scalar_lea.vmem %s25_s14, 1024  ;;  %p799_p6 = scmp.lt.s32.totalorder %s25_s14, %s25_s14 }
  0x10   :  { %p795_p5 = scmp.ne.s32.totalorder %s25_s14, %s794_s20  ;;  %p800_p7 = scmp.lt.s32.totalorder %s794_s20, %s794_s20 }
  0x12   :  { %p801_p8 = por %p800_p7, %p799_p6 }
  0x14   :  { %p802_p9 = pnand %p801_p8, %p795_p5 }
  0x16   :  { %805 = shalt.err (!%p802_p9)
}
  0x17   :  { %30 = dma.hbm_to_vmem [thread:$0]  %s1004_s0, 1024, %s25_s14, [#allocation3], %s876_s16, %s876_s16, %s877_s17  }
  0x18   :  { %s878_s23 = smov [#allocation7]   ;;  %s879_s25 = smov [#allocation8]  }
  0x19   :  { %s52_s24 = sshll.u32 %s878_s23, 4  ;;  %s70_s26 = sshll.u32 %s879_s25, 4  ;;  %s53_s24 = int_to_ptr.vmem [resolvable:$true] %s52_s24  ;;  %s71_s26 = int_to_ptr.vmem [resolvable:$true] %s70_s26 }
  0x1a   :  { %s814_s1 = scalar_lea.vmem %s53_s24, 1024  ;;  %p819_p11 = scmp.lt.s32.totalorder %s53_s24, %s53_s24 }
  0x1b   :  { %p815_p10 = scmp.ne.s32.totalorder %s53_s24, %s814_s1  ;;  %p820_p12 = scmp.lt.s32.totalorder %s814_s1, %s814_s1 }
  0x1d   :  { %p821_p13 = por %p820_p12, %p819_p11 }
  0x1f   :  { %p822_p0 = pnand %p821_p13, %p815_p10 }
  0x21   :  { %825 = shalt.err (!%p822_p0)
}
  0x22   :  { %58 = dma.hbm_to_vmem [thread:$0]  %s1008_s4, 1024, %s53_s24, [#allocation6], %s876_s16, %s876_s16, %s877_s17  }
  0x23   :  { %s834_s0 = scalar_lea.vmem %s71_s26, 1024  ;;  %p839_p2 = scmp.lt.s32.totalorder %s71_s26, %s71_s26 }
  0x24   :  { %p835_p1 = scmp.ne.s32.totalorder %s71_s26, %s834_s0  ;;  %p840_p3 = scmp.lt.s32.totalorder %s834_s0, %s834_s0 }
  0x26   :  { %p841_p4 = por %p840_p3, %p839_p2 }
  0x28   :  { %p842_p5 = pnand %p841_p4, %p835_p1 }
  0x2a   :  { %845 = shalt.err (!%p842_p5)
}
  0x2b   :  { %76 = dma.hbm_to_vmem [thread:$0]  %s1012_s8, 1024, %s71_s26, [#allocation9], %s876_s16, %s876_s16, %s877_s17  }
  0x2c   :  { %866 = dma.done.wait [#allocation3], 1024  }
  0x2d   :  { %867 = vsyncadd [#allocation3], 4294966272 }
  0x2e   :  { %868 = dma.done.wait [#allocation6], 2048  }
  0x2f   :  { %869 = vsyncadd [#allocation6], 4294965248 }
  0x30   :  { %870 = dma.done.wait [#allocation9], 1024  }
  0x31   :  { %871 = vsyncadd [#allocation9], 4294966272  ;;  %v106_v0 = vld [vmem:[#allocation5 + $0x38] sm:$0xff]  ;;  %v105_v1 = vld [vmem:[#allocation5 + $0x30] sm:$0xff]  ;;  %vm107_vm0 = vcmask 523264   ;;  %v880_v25 = vmov 0  }
  0x32   :  { %680 = vmatprep.subr.mxu0 %v106_v0  ;;  %v104_v2 = vld [vmem:[#allocation5 + $0x28] sm:$0xff]  ;;  %v91_v3 = vld [vmem:[#allocation2] sm:$0xff]  ;;  %v269_v5 = vld [vmem:[#allocation7 + $0x38] sm:$0xff]  ;;  %765 = vset.pattern.permute.xlu0 %v880_v25  ;;  %v881_v59 = vmov 0.0   ;;  %vm882_vm1 = vmmov 0   ;;  %vm517_vm2 = vcmask 1041409  }
  0x33   :  { %681 = vmatpush3.msra.mxu0 %v106_v0  ;;  %696 = vmatprep.mubr.msk.f32.mxu0 %vm107_vm0, %v91_v3  ;;  %v103_v4 = vld [vmem:[#allocation5 + $0x20] sm:$0xff]  ;;  %v268_v6 = vld [vmem:[#allocation7 + $0x30] sm:$0xff]  ;;  %v102_v7 = vld [vmem:[#allocation5 + $0x18] sm:$0xff]  ;;  %vm519_vm3 = vcmask 1042434   ;;  %vm521_vm4 = vcmask 1043459   ;;  %vm523_vm5 = vcmask 1044484  }
  0x34   :  { %682 = vmatprep.subr.mxu0 %v105_v1  ;;  %708 = vmatprep.subr.mxu1 %v269_v5  ;;  %v267_v8 = vld [vmem:[#allocation7 + $0x28] sm:$0xff]  ;;  %v101_v9 = vld [vmem:[#allocation5 + $0x10] sm:$0xff]  ;;  %v99_v11 = vld [vmem:[#allocation5] sm:$0xff]  ;;  %vm525_vm6 = vcmask 1045509   ;;  %vm527_vm7 = vcmask 1046534   ;;  %vm529_vm8 = vcmask 1047559  }
  0x35   :  { %683 = vmatpush3.msra.mxu0 %v105_v1  ;;  %709 = vmatpush3.msra.mxu1 %v269_v5  ;;  %v100_v10 = vld [vmem:[#allocation5 + $0x8] sm:$0xff]  ;;  %v93_v13 = vld [vmem:[#allocation2 + $0x10] sm:$0xff]  ;;  %v94_v14 = vld [vmem:[#allocation2 + $0x18] sm:$0xff]  ;;  %s883_s12 = smov [#allocation10]  }
  0x36   :  { %684 = vmatprep.subr.mxu0 %v104_v2  ;;  %710 = vmatprep.subr.mxu1 %v268_v6  ;;  %v92_v12 = vld [vmem:[#allocation2 + $0x8] sm:$0xff]  ;;  %v95_v15 = vld [vmem:[#allocation2 + $0x20] sm:$0xff]  ;;  %v97_v17 = vld [vmem:[#allocation2 + $0x30] sm:$0xff]  ;;  %s610_s13 = sshll.u32 %s883_s12, 4  ;;  %s611_s13 = int_to_ptr.vmem [resolvable:$true] %s610_s13 }
  0x37   :  { %685 = vmatpush3.msra.mxu0 %v104_v2  ;;  %711 = vmatpush3.msra.mxu1 %v268_v6  ;;  %v96_v16 = vld [vmem:[#allocation2 + $0x28] sm:$0xff]  ;;  %v98_v18 = vld [vmem:[#allocation2 + $0x38] sm:$0xff]  ;;  %v266_v19 = vld [vmem:[#allocation7 + $0x20] sm:$0xff]  ;;  %s846_s14 = scalar_lea.vmem %s611_s13, 128  ;;  %p851_p7 = scmp.lt.s32.totalorder %s611_s13, %s611_s13 }
  0x38   :  { %686 = vmatprep.subr.mxu0 %v103_v4  ;;  %712 = vmatprep.subr.mxu1 %v267_v8  ;;  %v265_v20 = vld [vmem:[#allocation7 + $0x18] sm:$0xff]  ;;  %v264_v21 = vld [vmem:[#allocation7 + $0x10] sm:$0xff]  ;;  %v263_v22 = vld [vmem:[#allocation7 + $0x8] sm:$0xff]  ;;  %p847_p6 = scmp.ne.s32.totalorder %s611_s13, %s846_s14  ;;  %p852_p8 = scmp.lt.s32.totalorder %s846_s14, %s846_s14 }
  0x39   :  { %687 = vmatpush3.msra.mxu0 %v103_v4  ;;  %713 = vmatpush3.msra.mxu1 %v267_v8  ;;  %v262_v23 = vld [vmem:[#allocation7] sm:$0xff]  ;;  %v501_v60 = vld [vmem:[#allocation8 + $0x38] sm:$0xff]  ;;  %v500_v61 = vld [vmem:[#allocation8 + $0x30] sm:$0xff] }
  0x3a   :  { %688 = vmatprep.subr.mxu0 %v102_v7  ;;  %714 = vmatprep.subr.mxu1 %v266_v19  ;;  %v424_v24 = vld [vmem:[%s1011_s7] sm:$0xff]  ;;  %v499_v62 = vld [vmem:[#allocation8 + $0x28] sm:$0xff]  ;;  %v497_v0 = vld [vmem:[#allocation8 + $0x18] sm:$0xff]  ;;  %p853_p9 = por %p852_p8, %p851_p7 }
  0x3b   :  { %689 = vmatpush3.msra.mxu0 %v102_v7  ;;  %715 = vmatpush3.msra.mxu1 %v266_v19  ;;  %v237_v26 = vld [vmem:[%s1007_s3] sm:$0xff]  ;;  %v496_v1 = vld [vmem:[#allocation8 + $0x10] sm:$0xff]  ;;  %v495_v2 = vld [vmem:[#allocation8 + $0x8] sm:$0xff] }
  0x3c   :  { %690 = vmatprep.subr.mxu0 %v101_v9  ;;  %716 = vmatprep.subr.mxu1 %v265_v20  ;;  %v498_v63 = vld [vmem:[#allocation8 + $0x20] sm:$0xff]  ;;  %p854_p10 = pnand %p853_p9, %p847_p6 }
  0x3d   :  { %691 = vmatpush3.msra.mxu0 %v101_v9  ;;  %717 = vmatpush3.msra.mxu1 %v265_v20  ;;  %v494_v3 = vld [vmem:[#allocation8] sm:$0xff] }
  0x3e   :  { %692 = vmatprep.subr.mxu0 %v100_v10  ;;  %718 = vmatprep.subr.mxu1 %v264_v21  ;;  %v399_v4 = vld [vmem:[%s1010_s6] sm:$0xff] }
  0x3f   :  { %693 = vmatpush3.msra.mxu0 %v100_v10  ;;  %719 = vmatpush3.msra.mxu1 %v264_v21 }
  0x40   :  { %694 = vmatprep.subr.mxu0 %v99_v11  ;;  %720 = vmatprep.subr.mxu1 %v263_v22 }
  0x41   :  { %695 = vmatpush3.msra.mxu0 %v99_v11  ;;  %721 = vmatpush3.msra.mxu1 %v263_v22 }
  0x42   :  { %697 = vmatmul.mubr.msk.f32.vlgmr.msra.gmra.mxu0 %vm107_vm0, %v92_v12  ;;  %722 = vmatprep.subr.mxu1 %v262_v23 }
  0x43   :  { %699 = vmatprep.mubr.msk.f32.mxu0 %vm107_vm0, %v93_v13  ;;  %723 = vmatpush3.msra.mxu1 %v262_v23 }
  0x44   :  { %427 = vperm.xlu0 %765, %v424_v24   ;;  %736 = vmatprep.subr.mxu0 %v881_v59 }
  0x45   :  { %737 = vmatpush3.msra.mxu0 %v501_v60 }
  0x46   :  { %700 = vmatmul.mubr.msk.f32.gmra.mxu0 %vm107_vm0, %v94_v14  ;;  %738 = vmatprep.subr.mxu0 %v881_v59 }
  0x47   :  { %702 = vmatprep.mubr.msk.f32.mxu0 %vm107_vm0, %v95_v15  ;;  %739 = vmatpush3.msra.mxu0 %v500_v61 }
  0x48   :  { %740 = vmatprep.subr.mxu0 %v881_v59 }
  0x49   :  { %741 = vmatpush3.msra.mxu0 %v499_v62 }
  0x4a   :  { %703 = vmatmul.mubr.msk.f32.gmra.mxu0 %vm107_vm0, %v96_v16  ;;  %742 = vmatprep.subr.mxu0 %v881_v59 }
  0x4b   :  { %705 = vmatprep.mubr.msk.f32.mxu0 %vm107_vm0, %v97_v17  ;;  %743 = vmatpush3.msra.mxu0 %v498_v63 }
  0x4c   :  { %744 = vmatprep.subr.mxu0 %v881_v59 }
  0x4d   :  { %745 = vmatpush3.msra.mxu0 %v497_v0 }
  0x4e   :  { %706 = vmatmul.mubr.msk.f32.gmra.mxu0 %vm107_vm0, %v98_v18  ;;  %746 = vmatprep.subr.mxu0 %v881_v59 }
  0x4f   :  { %752 = vmatprep.mubr.msk.f32.mxu0 %vm882_vm1, %v881_v59  ;;  %747 = vmatpush3.msra.mxu0 %v496_v1 }
  0x50   :  { %748 = vmatprep.subr.mxu0 %v881_v59 }
  0x51   :  { %749 = vmatpush3.msra.mxu0 %v495_v2 }
  0x52   :  { %750 = vmatprep.subr.mxu0 %v881_v59 }
  0x53   :  { %751 = vmatpush3.msra.mxu0 %v494_v3 }
  0xbf   :  { %v428_v11 = vpop.permute.xlu0 %427 }
 0x102   :  { %v698_v27 = vpop.f32.mrf.mxu0 }
 0x103   :  { %v239_v28 = vadd.f32 %v698_v27, %v237_v26 }
 0x104   :  { %v198_v29 = vpop.f32.mrf.mxu0 }
 0x105   :  { %v238_v30 = vadd.f32 %v237_v26, %v198_v29  ;;  %v247_v31 = vmul.f32 0.01, %v239_v28 }
 0x106   :  { %v701_v32 = vpop.f32.mrf.mxu0 }
 0x107   :  { %v246_v33 = vmul.f32 0.01, %v238_v30  ;;  %v241_v34 = vadd.f32 %v701_v32, %v237_v26  ;;  %v255_v38 = vmax.f32 %v239_v28, %v247_v31 }
 0x108   :  { %v208_v35 = vpop.f32.mrf.mxu0 }
 0x109   :  { %v240_v36 = vadd.f32 %v237_v26, %v208_v35  ;;  %v254_v37 = vmax.f32 %v238_v30, %v246_v33  ;;  %v249_v39 = vmul.f32 0.01, %v241_v34 }
 0x10a   :  { %v704_v40 = vpop.f32.mrf.mxu0 }
 0x10b   :  { %v248_v41 = vmul.f32 0.01, %v240_v36  ;;  %v243_v42 = vadd.f32 %v704_v40, %v237_v26  ;;  %724 = vmatprep.mubr.msk.f32.mxu1 %vm107_vm0, %v254_v37  ;;  %v257_v46 = vmax.f32 %v241_v34, %v249_v39 }
 0x10c   :  { %v218_v43 = vpop.f32.mrf.mxu0  ;;  %725 = vmatmul.mubr.msk.f32.vlgmr.msra.gmra.mxu1 %vm107_vm0, %v255_v38 }
 0x10d   :  { %v256_v44 = vmax.f32 %v240_v36, %v248_v41  ;;  %v242_v45 = vadd.f32 %v237_v26, %v218_v43  ;;  %v251_v47 = vmul.f32 0.01, %v243_v42 }
 0x10e   :  { %v707_v48 = vpop.f32.mrf.mxu0 }
 0x10f   :  { %v250_v49 = vmul.f32 0.01, %v242_v45  ;;  %v245_v50 = vadd.f32 %v707_v48, %v237_v26  ;;  %727 = vmatprep.mubr.msk.f32.mxu1 %vm107_vm0, %v256_v44  ;;  %v259_v54 = vmax.f32 %v243_v42, %v251_v47 }
 0x110   :  { %v228_v51 = vpop.f32.mrf.mxu0  ;;  %728 = vmatmul.mubr.msk.f32.gmra.mxu1 %vm107_vm0, %v257_v46 }
 0x111   :  { %v258_v52 = vmax.f32 %v242_v45, %v250_v49  ;;  %v244_v53 = vadd.f32 %v237_v26, %v228_v51  ;;  %v253_v55 = vmul.f32 0.01, %v245_v50 }
 0x113   :  { %v252_v56 = vmul.f32 0.01, %v244_v53  ;;  %730 = vmatprep.mubr.msk.f32.mxu1 %vm107_vm0, %v258_v52  ;;  %v261_v58 = vmax.f32 %v245_v50, %v253_v55 }
 0x114   :  { %731 = vmatmul.mubr.msk.f32.gmra.mxu1 %vm107_vm0, %v259_v54 }
 0x115   :  { %v260_v57 = vmax.f32 %v244_v53, %v252_v56 }
 0x117   :  { %733 = vmatprep.mubr.msk.f32.mxu1 %vm107_vm0, %v260_v57 }
 0x118   :  { %734 = vmatmul.mubr.msk.f32.gmra.mxu1 %vm107_vm0, %v261_v58 }
 0x1cc   :  { %v726_v5 = vpop.f32.mrf.mxu1 }
 0x1cd   :  { %v401_v6 = vadd.f32 %v726_v5, %v399_v4 }
 0x1ce   :  { %v360_v7 = vpop.f32.mrf.mxu1 }
 0x1cf   :  { %v409_v8 = vmul.f32 0.01, %v401_v6  ;;  %v400_v9 = vadd.f32 %v399_v4, %v360_v7 }
 0x1d0   :  { %v729_v10 = vpop.f32.mrf.mxu1 }
 0x1d1   :  { %v417_v12 = vmax.f32 %v401_v6, %v409_v8  ;;  %v408_v13 = vmul.f32 0.01, %v400_v9  ;;  %v403_v14 = vadd.f32 %v729_v10, %v399_v4 }
 0x1d2   :  { %v370_v15 = vpop.f32.mrf.mxu1 }
 0x1d3   :  { %v416_v16 = vmax.f32 %v400_v9, %v408_v13  ;;  %v411_v17 = vmul.f32 0.01, %v403_v14  ;;  %v431_v18 = vmul.f32 %v428_v11, %v417_v12  ;;  %v402_v19 = vadd.f32 %v399_v4, %v370_v15 }
 0x1d4   :  { %v732_v20 = vpop.f32.mrf.mxu1 }
 0x1d5   :  { %v419_v21 = vmax.f32 %v403_v14, %v411_v17  ;;  %v430_v22 = vmul.f32 %v428_v11, %v416_v16  ;;  %v445_v23 = vsel %vm107_vm0, %v431_v18, 0.0  ;;  %v410_v24 = vmul.f32 0.01, %v402_v19 }
 0x1d6   :  { %v446_v25 = vrot.slane %v445_v23, 4  ;;  %v405_v26 = vadd.f32 %v732_v20, %v399_v4  ;;  %v380_v27 = vpop.f32.mrf.mxu1 }
 0x1d7   :  { %v433_v28 = vmul.f32 %v428_v11, %v419_v21  ;;  %v438_v29 = vsel %vm107_vm0, %v430_v22, 0.0  ;;  %v418_v30 = vmax.f32 %v402_v19, %v410_v24  ;;  %v404_v31 = vadd.f32 %v399_v4, %v380_v27 }
 0x1d8   :  { %v439_v32 = vrot.slane %v438_v29, 4  ;;  %v447_v33 = vadd.f32 %v446_v25, %v445_v23  ;;  %v413_v34 = vmul.f32 0.01, %v405_v26  ;;  %v735_v35 = vpop.f32.mrf.mxu1 }
 0x1d9   :  { %v459_v36 = vsel %vm107_vm0, %v433_v28, 0.0  ;;  %v432_v37 = vmul.f32 %v428_v11, %v418_v30  ;;  %v412_v38 = vmul.f32 0.01, %v404_v31  ;;  %v407_v39 = vadd.f32 %v735_v35, %v399_v4 }
 0x1da   :  { %v440_v40 = vadd.f32 %v439_v32, %v438_v29  ;;  %v448_v41 = vrot.slane %v447_v33, 2  ;;  %v460_v42 = vrot.slane %v459_v36, 4  ;;  %v421_v43 = vmax.f32 %v405_v26, %v413_v34  ;;  %v390_v44 = vpop.f32.mrf.mxu1 }
 0x1db   :  { %v452_v45 = vsel %vm107_vm0, %v432_v37, 0.0  ;;  %v420_v46 = vmax.f32 %v404_v31, %v412_v38  ;;  %v415_v47 = vmul.f32 0.01, %v407_v39  ;;  %v406_v48 = vadd.f32 %v399_v4, %v390_v44 }
 0x1dc   :  { %v441_v49 = vrot.slane %v440_v40, 2  ;;  %v449_v50 = vadd.f32 %v448_v41, %v447_v33  ;;  %v461_v51 = vadd.f32 %v460_v42, %v459_v36  ;;  %v453_v52 = vrot.slane %v452_v45, 4 }
 0x1dd   :  { %v435_v53 = vmul.f32 %v428_v11, %v421_v43  ;;  %v434_v54 = vmul.f32 %v428_v11, %v420_v46  ;;  %v423_v55 = vmax.f32 %v407_v39, %v415_v47  ;;  %v414_v56 = vmul.f32 0.01, %v406_v48 }
 0x1de   :  { %v442_v57 = vadd.f32 %v441_v49, %v440_v40  ;;  %v462_v58 = vrot.slane %v461_v51, 2  ;;  %v454_v59 = vadd.f32 %v453_v52, %v452_v45  ;;  %v450_v1 = vrot.slane %v449_v50, 1  ;;  %v637_v45 = vld [vmem:[%s1013_s9] ss:$0 sm:$0xff] }
 0x1df   :  { %v473_v60 = vsel %vm107_vm0, %v435_v53, 0.0  ;;  %v466_v61 = vsel %vm107_vm0, %v434_v54, 0.0  ;;  %v437_v62 = vmul.f32 %v428_v11, %v423_v55  ;;  %v422_v63 = vmax.f32 %v406_v48, %v414_v56 }
 0x1e0   :  { %v443_v0 = vrot.slane %v442_v57, 1  ;;  %v455_v2 = vrot.slane %v454_v59, 2  ;;  %v474_v3 = vrot.slane %v473_v60, 4  ;;  %v467_v4 = vrot.slane %v466_v61, 4 }
 0x1e1   :  { %v487_v5 = vsel %vm107_vm0, %v437_v62, 0.0  ;;  %v436_v6 = vmul.f32 %v428_v11, %v422_v63  ;;  %v463_v7 = vadd.f32 %v462_v58, %v461_v51  ;;  %v451_v18 = vadd.f32 %v450_v1, %v449_v50 }
 0x1e2   :  { %v456_v8 = vadd.f32 %v455_v2, %v454_v59  ;;  %v488_v9 = vrot.slane %v487_v5, 4  ;;  %v475_v10 = vadd.f32 %v474_v3, %v473_v60  ;;  %v468_v12 = vadd.f32 %v467_v4, %v466_v61 }
 0x1e3   :  { %v480_v13 = vsel %vm107_vm0, %v436_v6, 0.0  ;;  %v444_v14 = vadd.f32 %v443_v0, %v442_v57  ;;  %v464_v21 = vrot.slane %v463_v7, 1 }
 0x1e4   :  { %v457_v15 = vrot.slane %v456_v8, 1  ;;  %v489_v16 = vadd.f32 %v488_v9, %v487_v5  ;;  %v481_v17 = vrot.slane %v480_v13, 4  ;;  %v476_v19 = vrot.slane %v475_v10, 2 }
 0x1e5   :  { %v469_v20 = vrot.slane %v468_v12, 2  ;;  %v518_v26 = vsel %vm517_vm2, %v451_v18, %v444_v14  ;;  %v465_v33 = vadd.f32 %v464_v21, %v463_v7 }
 0x1e6   :  { %v458_v22 = vadd.f32 %v457_v15, %v456_v8  ;;  %v490_v23 = vrot.slane %v489_v16, 2  ;;  %v482_v11 = vadd.f32 %v481_v17, %v480_v13  ;;  %v477_v24 = vadd.f32 %v476_v19, %v475_v10 }
 0x1e7   :  { %v470_v25 = vadd.f32 %v469_v20, %v468_v12 }
 0x1e8   :  { %v491_v27 = vadd.f32 %v490_v23, %v489_v16  ;;  %v483_v28 = vrot.slane %v482_v11, 2  ;;  %v520_v29 = vsel %vm519_vm3, %v458_v22, %v518_v26  ;;  %v478_v30 = vrot.slane %v477_v24, 1 }
 0x1e9   :  { %v471_v31 = vrot.slane %v470_v25, 1  ;;  %v522_v37 = vsel %vm521_vm4, %v465_v33, %v520_v29 }
 0x1ea   :  { %v484_v32 = vadd.f32 %v483_v28, %v482_v11  ;;  %v492_v35 = vrot.slane %v491_v27, 1  ;;  %v479_v38 = vadd.f32 %v478_v30, %v477_v24 }
 0x1eb   :  { %v472_v34 = vadd.f32 %v471_v31, %v470_v25 }
 0x1ec   :  { %v485_v36 = vrot.slane %v484_v32, 1  ;;  %v493_v41 = vadd.f32 %v492_v35, %v491_v27 }
 0x1ed   :  { %v524_v39 = vsel %vm523_vm5, %v472_v34, %v522_v37 }
 0x1ee   :  { %v486_v40 = vadd.f32 %v485_v36, %v484_v32  ;;  %v526_v42 = vsel %vm525_vm6, %v479_v38, %v524_v39 }
 0x1f0   :  { %v528_v43 = vsel %vm527_vm7, %v486_v40, %v526_v42 }
 0x1f1   :  { %v530_v44 = vsel %vm529_vm8, %v493_v41, %v528_v43 }
 0x1f2   :  { %753 = vmatmul.mubr.msk.f32.vlgmr.msra.gmra.mxu0 %vm107_vm0, %v530_v44 }
 0x2b2   :  { %v599_v46 = vpop.f32.mrf.mxu0 }
 0x2b3   :  { %v600_v47 = vadd.f32 %v637_v45, %v599_v46 }
 0x2b4   :  { %v754_v48 = vpop.f32.mrf.mxu0 }
 0x2b5   :  { %603 = vst [vmem:[#allocation10] sm:$0xff] %v600_v47 }
 0x2b6   :  { %857 = shalt.err (!%p854_p10)
}
 0x2b7   :  { %613 = dma.vmem_to_hbm [thread:$0]  %s611_s13, 128, %s1014_s10, [#allocation4]  }
 0x2b8   :  { %872 = dma.done.wait [#allocation4], 128  }
 0x2b9   :  { %873 = vsyncadd [#allocation4], 4294967168 }
 0x2ba   :  { %617 = vsyncpa [#allocation3], 1 }
 0x2bb   :  { %618 = vsyncpa [#allocation6], 1 }
 0x2bc   :  { %619 = vsyncpa [#allocation9], 1 }
 0x2bd   :  { %620 = vsyncpa [#allocation4], 1 }

</bundles_post_ra>
